<compile_context>
chip_gen: v7x
topology: tpu7x:2x2x1
jax: 0.10.0
libtpu: 0.0.40
codegen_flags: <defaults>
</compile_context>

<pallas_src>
import functools

import jax
import jax.numpy as jnp
from jax import lax
from jax.experimental import pallas as pl
from jax.experimental.pallas import tpu as pltpu


def _round_up(a, b):
    return ((a + b - 1) // b) * b


def _decoder_kernel(x_ref, rowb_ref, z_ref,
                    w1x_ref, w1z_ref, b1_ref,
                    w2_ref, b2_ref,
                    w3_ref, b3_ref,
                    wh_ref, bh_ref,
                    out_ref, *, y_dim):
    """One row-tile of the decoder MLP. All weights + z live fully in VMEM."""
    tile_m = x_ref.shape[0]
    batch = z_ref.shape[0]

    # ---- layer 1: split x / z contributions (no replicated-z input) ----
    xw = jnp.dot(x_ref[...], w1x_ref[...], preferred_element_type=jnp.float32)   # (TM, h)
    zw = jnp.dot(z_ref[...], w1z_ref[...], preferred_element_type=jnp.float32)   # (B, h)
    # one-hot row->batch selector; MXU matmul acts as the broadcast/gather.
    sel = (rowb_ref[...] ==
           lax.broadcasted_iota(jnp.int32, (tile_m, batch), 1)).astype(jnp.float32)
    zb = jnp.dot(sel, zw, preferred_element_type=jnp.float32)                     # (TM, h)
    h = jax.nn.sigmoid(xw + zb + b1_ref[...])

    # ---- hidden layers ----
    h = jax.nn.sigmoid(jnp.dot(h, w2_ref[...],
                               preferred_element_type=jnp.float32) + b2_ref[...])
    h = jax.nn.sigmoid(jnp.dot(h, w3_ref[...],
                               preferred_element_type=jnp.float32) + b3_ref[...])

    # ---- fused mu | sigma head: one matmul, one (masked) store ----
    head = jnp.dot(h, wh_ref[...], preferred_element_type=jnp.float32) + bh_ref[...]
    col = lax.broadcasted_iota(jnp.int32, head.shape, 1)
    # first y_dim columns: mu ; last y_dim columns: 0.1 + 0.9 * softplus(pre_sigma)
    out_ref[...] = jnp.where(col < y_dim, head, 0.1 + 0.9 * jax.nn.softplus(head))


def decoder_forward(x, z, params, *, tile_m_max=512):
    """Pallas-backed forward pass of the Decoder.

    x : (batch, num_points, x_dim)   float32
    z : (batch, z_dim)               float32
    returns (mu, sigma), each (batch, num_points, y_dim)
    """
    batch, num_points, x_dim = x.shape
    z_dim = z.shape[-1]
    h_dim = params["w1"].shape[1]
    y_dim = params["wmu"].shape[1]

    M = batch * num_points
    # Large row tile for MXU / pipeline efficiency; keep >= 2 grid steps when
    # there is enough work (v7x megacore), always a multiple of 8 (f32 sublane).
    tile_m = min(tile_m_max, max(8, _round_up((M + 1) // 2, 8)))
    M_pad = _round_up(M, tile_m)
    grid = (M_pad // tile_m,)

    x_flat = x.reshape(M, x_dim)
    if M_pad != M:
        x_flat = jnp.pad(x_flat, ((0, M_pad - M), (0, 0)))
    # row -> batch index (padded rows get indices >= batch => zero selector row).
    row_batch = (jnp.arange(M_pad, dtype=jnp.int32) // num_points).reshape(M_pad, 1)

    # Split layer-1 weight and fuse the two heads (done once, inside the jit).
    w1x = params["w1"][:x_dim]
    w1z = params["w1"][x_dim:]
    w_head = jnp.concatenate([params["wmu"], params["wsg"]], axis=1)   # (h, 2y)
    b_head = jnp.concatenate([params["bmu"], params["bsg"]], axis=1)   # (1, 2y)

    def row_spec(feat):
        return pl.BlockSpec((tile_m, feat), lambda i: (i, 0))

    def const_spec(shape):
        return pl.BlockSpec(shape, lambda i: (0, 0))

    in_specs = [
        row_spec(x_dim),                       # x rows
        row_spec(1),                           # row -> batch index
        const_spec((batch, z_dim)),            # z (resident)
        const_spec((x_dim, h_dim)), const_spec((z_dim, h_dim)), const_spec((1, h_dim)),
        const_spec((h_dim, h_dim)), const_spec((1, h_dim)),
        const_spec((h_dim, h_dim)), const_spec((1, h_dim)),
        const_spec((h_dim, 2 * y_dim)), const_spec((1, 2 * y_dim)),
    ]
    out_specs = row_spec(2 * y_dim)

    flops = 2 * M_pad * ((x_dim + z_dim) * h_dim + 2 * h_dim * h_dim + 2 * h_dim * y_dim)
    transcendentals = M_pad * (3 * h_dim + 2 * y_dim)
    bytes_accessed = 4 * (M_pad * (x_dim + 1 + 2 * y_dim) + batch * z_dim
                          + (x_dim + z_dim) * h_dim + 2 * h_dim * h_dim
                          + 2 * h_dim * y_dim + 3 * h_dim + 2 * y_dim)

    out = pl.pallas_call(
        functools.partial(_decoder_kernel, y_dim=y_dim),
        out_shape=jax.ShapeDtypeStruct((M_pad, 2 * y_dim), jnp.float32),
        grid_spec=pltpu.PrefetchScalarGridSpec(
            num_scalar_prefetch=0,
            grid=grid,
            in_specs=in_specs,
            out_specs=out_specs,
        ),
        compiler_params=pltpu.CompilerParams(
            dimension_semantics=("parallel",),
            vmem_limit_bytes=32 * 1024 * 1024,
        ),
        cost_estimate=pl.CostEstimate(
            flops=flops,
            transcendentals=transcendentals,
            bytes_accessed=bytes_accessed,
        ),
    )(x_flat, row_batch, z,
      w1x, w1z, params["b1"],
      params["w2"], params["b2"],
      params["w3"], params["b3"],
      w_head, b_head)

    mu = out[:M, :y_dim].reshape(batch, num_points, y_dim)
    sigma = out[:M, y_dim:].reshape(batch, num_points, y_dim)
    return mu, sigma


def init_decoder_params(key, x_dim, z_dim, h_dim, y_dim):
    """Deterministic PyTorch-Linear-style (uniform +/- 1/sqrt(fan_in)) init."""
    def linear(k, fan_in, fan_out):
        kw, kb = jax.random.split(k)
        bound = 1.0 / jnp.sqrt(fan_in)
        w = jax.random.uniform(kw, (fan_in, fan_out), jnp.float32, -bound, bound)
        b = jax.random.uniform(kb, (1, fan_out), jnp.float32, -bound, bound)
        return w, b

    keys = jax.random.split(key, 5)
    w1, b1 = linear(keys[0], x_dim + z_dim, h_dim)
    w2, b2 = linear(keys[1], h_dim, h_dim)
    w3, b3 = linear(keys[2], h_dim, h_dim)
    wmu, bmu = linear(keys[3], h_dim, y_dim)
    wsg, bsg = linear(keys[4], h_dim, y_dim)
    return dict(w1=w1, b1=b1, w2=w2, b2=b2, w3=w3, b3=b3,
                wmu=wmu, bmu=bmu, wsg=wsg, bsg=bsg)


def decoder_forward_ref(x, z, params):
    """Pure-JAX reference for correctness check."""
    batch, num_points, x_dim = x.shape
    z_rep = jnp.broadcast_to(z[:, None, :], (batch, num_points, z.shape[-1]))
    xz = jnp.concatenate([x, z_rep], axis=-1).reshape(batch * num_points, -1)
    h = jax.nn.sigmoid(xz @ params["w1"] + params["b1"])
    h = jax.nn.sigmoid(h @ params["w2"] + params["b2"])
    h = jax.nn.sigmoid(h @ params["w3"] + params["b3"])
    mu = (h @ params["wmu"] + params["bmu"]).reshape(batch, num_points, -1)
    pre = (h @ params["wsg"] + params["bsg"]).reshape(batch, num_points, -1)
    sigma = 0.1 + 0.9 * jax.nn.softplus(pre)
    return mu, sigma


if __name__ == "__main__":
    # Small shapes consistent with the module's forward contract.
    x_dim, z_dim, h_dim, y_dim = 3, 8, 32, 2
    batch, num_points = 2, 8

    key = jax.random.PRNGKey(0)
    k_params, k_x, k_z = jax.random.split(key, 3)

    params = init_decoder_params(k_params, x_dim, z_dim, h_dim, y_dim)
    x = jax.random.normal(k_x, (batch, num_points, x_dim), jnp.float32)
    z = jax.random.normal(k_z, (batch, z_dim), jnp.float32)

    mu, sigma = jax.jit(functools.partial(decoder_forward, params=params))(x, z)
    mu = jax.block_until_ready(mu)
    sigma = jax.block_until_ready(sigma)

    # Sanity check against the pure-JAX reference.
    mu_ref, sigma_ref = decoder_forward_ref(x, z, params)
    assert mu.shape == (batch, num_points, y_dim)
    assert sigma.shape == (batch, num_points, y_dim)
    assert jnp.allclose(mu, mu_ref, atol=1e-4, rtol=1e-4)
    assert jnp.allclose(sigma, sigma_ref, atol=1e-4, rtol=1e-4)
    assert bool(jnp.all(sigma > 0.1))

    print("KERNEL_OK")
</pallas_src>

<mosaic_0001>
module attributes {stable_mosaic.version = 11 : i64} {
  func.func @_decoder_kernel(%arg0: i32, %arg1: memref<8x3xf32, #tpu.memory_space<vmem>>, %arg2: memref<8x1xi32, #tpu.memory_space<vmem>>, %arg3: memref<2x8xf32, #tpu.memory_space<vmem>>, %arg4: memref<3x32xf32, #tpu.memory_space<vmem>>, %arg5: memref<8x32xf32, #tpu.memory_space<vmem>>, %arg6: memref<1x32xf32, #tpu.memory_space<vmem>>, %arg7: memref<32x32xf32, #tpu.memory_space<vmem>>, %arg8: memref<1x32xf32, #tpu.memory_space<vmem>>, %arg9: memref<32x32xf32, #tpu.memory_space<vmem>>, %arg10: memref<1x32xf32, #tpu.memory_space<vmem>>, %arg11: memref<32x4xf32, #tpu.memory_space<vmem>>, %arg12: memref<1x4xf32, #tpu.memory_space<vmem>>, %arg13: memref<8x4xf32, #tpu.memory_space<vmem>>) attributes {dimension_semantics = [#tpu.dimension_semantics<parallel>], iteration_bounds = array<i64: 2>, scalar_prefetch = 0 : i64, scratch_operands = 0 : i64, tpu.core_type = #tpu.core_type<tc>, window_params = [{transform_indices = @transform_0, window_bounds = array<i64: 8, 3>}, {transform_indices = @transform_1, window_bounds = array<i64: 8, 1>}, {pipeline_mode = #tpu.pipeline_mode<synchronous>, transform_indices = @transform_2, window_bounds = array<i64: 2, 8>}, {pipeline_mode = #tpu.pipeline_mode<synchronous>, transform_indices = @transform_3, window_bounds = array<i64: 3, 32>}, {pipeline_mode = #tpu.pipeline_mode<synchronous>, transform_indices = @transform_4, window_bounds = array<i64: 8, 32>}, {pipeline_mode = #tpu.pipeline_mode<synchronous>, transform_indices = @transform_5, window_bounds = array<i64: 1, 32>}, {pipeline_mode = #tpu.pipeline_mode<synchronous>, transform_indices = @transform_6, window_bounds = array<i64: 32, 32>}, {pipeline_mode = #tpu.pipeline_mode<synchronous>, transform_indices = @transform_7, window_bounds = array<i64: 1, 32>}, {pipeline_mode = #tpu.pipeline_mode<synchronous>, transform_indices = @transform_8, window_bounds = array<i64: 32, 32>}, {pipeline_mode = #tpu.pipeline_mode<synchronous>, transform_indices = @transform_9, window_bounds = array<i64: 1, 32>}, {pipeline_mode = #tpu.pipeline_mode<synchronous>, transform_indices = @transform_10, window_bounds = array<i64: 32, 4>}, {pipeline_mode = #tpu.pipeline_mode<synchronous>, transform_indices = @transform_11, window_bounds = array<i64: 1, 4>}, {transform_indices = @transform_12, window_bounds = array<i64: 8, 4>}]} {
    %c0 = arith.constant 0 : index
    %c0_0 = arith.constant 0 : index
    %0 = vector.load %arg1[%c0, %c0_0] : memref<8x3xf32, #tpu.memory_space<vmem>>, vector<8x3xf32>
    %c0_1 = arith.constant 0 : index
    %c0_2 = arith.constant 0 : index
    %1 = vector.load %arg4[%c0_1, %c0_2] : memref<3x32xf32, #tpu.memory_space<vmem>>, vector<3x32xf32>
    %cst = arith.constant dense<0.000000e+00> : vector<8x32xf32>
    %2 = tpu.matmul %0, %1, %cst {dimension_numbers = #tpu.dot_dimension_numbers<[1], [0], [0], [1], [0, 0, 1, 1], [], []>} : vector<8x3xf32>, vector<3x32xf32>, vector<8x32xf32> -> vector<8x32xf32>
    %c0_3 = arith.constant 0 : index
    %c0_4 = arith.constant 0 : index
    %3 = vector.load %arg3[%c0_3, %c0_4] : memref<2x8xf32, #tpu.memory_space<vmem>>, vector<2x8xf32>
    %c0_5 = arith.constant 0 : index
    %c0_6 = arith.constant 0 : index
    %4 = vector.load %arg5[%c0_5, %c0_6] : memref<8x32xf32, #tpu.memory_space<vmem>>, vector<8x32xf32>
    %cst_7 = arith.constant dense<0.000000e+00> : vector<2x32xf32>
    %5 = tpu.matmul %3, %4, %cst_7 {dimension_numbers = #tpu.dot_dimension_numbers<[1], [0], [0], [1], [0, 0, 1, 1], [], []>} : vector<2x8xf32>, vector<8x32xf32>, vector<2x32xf32> -> vector<2x32xf32>
    %c0_8 = arith.constant 0 : index
    %c0_9 = arith.constant 0 : index
    %6 = vector.load %arg2[%c0_8, %c0_9] : memref<8x1xi32, #tpu.memory_space<vmem>>, vector<8x1xi32>
    %7 = tpu.iota {dimensions = array<i32: 1>} : vector<8x2xi32>
    %8 = vector.broadcast %6 : vector<8x1xi32> to vector<8x2xi32>
    %9 = arith.cmpi eq, %8, %7 : vector<8x2xi32>
    %10 = arith.extui %9 : vector<8x2xi1> to vector<8x2xi32>
    %11 = arith.sitofp %10 : vector<8x2xi32> to vector<8x2xf32>
    %cst_10 = arith.constant dense<0.000000e+00> : vector<8x32xf32>
    %12 = tpu.matmul %11, %5, %cst_10 {dimension_numbers = #tpu.dot_dimension_numbers<[1], [0], [0], [1], [0, 0, 1, 1], [], []>} : vector<8x2xf32>, vector<2x32xf32>, vector<8x32xf32> -> vector<8x32xf32>
    %13 = arith.addf %2, %12 : vector<8x32xf32>
    %c0_11 = arith.constant 0 : index
    %c0_12 = arith.constant 0 : index
    %14 = vector.load %arg6[%c0_11, %c0_12] : memref<1x32xf32, #tpu.memory_space<vmem>>, vector<1x32xf32>
    %15 = vector.broadcast %14 : vector<1x32xf32> to vector<8x32xf32>
    %16 = arith.addf %13, %15 : vector<8x32xf32>
    %17 = arith.negf %16 : vector<8x32xf32>
    %18 = math.exp %17 : vector<8x32xf32>
    %cst_13 = arith.constant 1.000000e+00 : f32
    %19 = vector.broadcast %cst_13 : f32 to vector<8x32xf32>
    %20 = arith.addf %19, %18 : vector<8x32xf32>
    %21 = arith.divf %19, %20 : vector<8x32xf32>
    %c0_14 = arith.constant 0 : index
    %c0_15 = arith.constant 0 : index
    %22 = vector.load %arg7[%c0_14, %c0_15] : memref<32x32xf32, #tpu.memory_space<vmem>>, vector<32x32xf32>
    %cst_16 = arith.constant dense<0.000000e+00> : vector<8x32xf32>
    %23 = tpu.matmul %21, %22, %cst_16 {dimension_numbers = #tpu.dot_dimension_numbers<[1], [0], [0], [1], [0, 0, 1, 1], [], []>} : vector<8x32xf32>, vector<32x32xf32>, vector<8x32xf32> -> vector<8x32xf32>
    %c0_17 = arith.constant 0 : index
    %c0_18 = arith.constant 0 : index
    %24 = vector.load %arg8[%c0_17, %c0_18] : memref<1x32xf32, #tpu.memory_space<vmem>>, vector<1x32xf32>
    %25 = vector.broadcast %24 : vector<1x32xf32> to vector<8x32xf32>
    %26 = arith.addf %23, %25 : vector<8x32xf32>
    %27 = arith.negf %26 : vector<8x32xf32>
    %28 = math.exp %27 : vector<8x32xf32>
    %cst_19 = arith.constant 1.000000e+00 : f32
    %29 = vector.broadcast %cst_19 : f32 to vector<8x32xf32>
    %30 = arith.addf %29, %28 : vector<8x32xf32>
    %31 = arith.divf %29, %30 : vector<8x32xf32>
    %c0_20 = arith.constant 0 : index
    %c0_21 = arith.constant 0 : index
    %32 = vector.load %arg9[%c0_20, %c0_21] : memref<32x32xf32, #tpu.memory_space<vmem>>, vector<32x32xf32>
    %cst_22 = arith.constant dense<0.000000e+00> : vector<8x32xf32>
    %33 = tpu.matmul %31, %32, %cst_22 {dimension_numbers = #tpu.dot_dimension_numbers<[1], [0], [0], [1], [0, 0, 1, 1], [], []>} : vector<8x32xf32>, vector<32x32xf32>, vector<8x32xf32> -> vector<8x32xf32>
    %c0_23 = arith.constant 0 : index
    %c0_24 = arith.constant 0 : index
    %34 = vector.load %arg10[%c0_23, %c0_24] : memref<1x32xf32, #tpu.memory_space<vmem>>, vector<1x32xf32>
    %35 = vector.broadcast %34 : vector<1x32xf32> to vector<8x32xf32>
    %36 = arith.addf %33, %35 : vector<8x32xf32>
    %37 = arith.negf %36 : vector<8x32xf32>
    %38 = math.exp %37 : vector<8x32xf32>
    %cst_25 = arith.constant 1.000000e+00 : f32
    %39 = vector.broadcast %cst_25 : f32 to vector<8x32xf32>
    %40 = arith.addf %39, %38 : vector<8x32xf32>
    %41 = arith.divf %39, %40 : vector<8x32xf32>
    %c0_26 = arith.constant 0 : index
    %c0_27 = arith.constant 0 : index
    %42 = vector.load %arg11[%c0_26, %c0_27] : memref<32x4xf32, #tpu.memory_space<vmem>>, vector<32x4xf32>
    %cst_28 = arith.constant dense<0.000000e+00> : vector<8x4xf32>
    %43 = tpu.matmul %41, %42, %cst_28 {dimension_numbers = #tpu.dot_dimension_numbers<[1], [0], [0], [1], [0, 0, 1, 1], [], []>} : vector<8x32xf32>, vector<32x4xf32>, vector<8x4xf32> -> vector<8x4xf32>
    %c0_29 = arith.constant 0 : index
    %c0_30 = arith.constant 0 : index
    %44 = vector.load %arg12[%c0_29, %c0_30] : memref<1x4xf32, #tpu.memory_space<vmem>>, vector<1x4xf32>
    %45 = vector.broadcast %44 : vector<1x4xf32> to vector<8x4xf32>
    %46 = arith.addf %43, %45 : vector<8x4xf32>
    %47 = tpu.iota {dimensions = array<i32: 1>} : vector<8x4xi32>
    %c2_i32 = arith.constant 2 : i32
    %48 = vector.broadcast %c2_i32 : i32 to vector<8x4xi32>
    %49 = arith.cmpi slt, %47, %48 : vector<8x4xi32>
    %cst_31 = arith.constant 0.000000e+00 : f32
    %50 = vector.broadcast %cst_31 : f32 to vector<8x4xf32>
    %51 = arith.maximumf %46, %50 : vector<8x4xf32>
    %52 = vector.broadcast %cst_31 : f32 to vector<8x4xf32>
    %53 = arith.subf %46, %52 : vector<8x4xf32>
    %54 = arith.cmpf one, %53, %53 : vector<8x4xf32>
    %55 = vector.broadcast %cst_31 : f32 to vector<8x4xf32>
    %56 = arith.addf %46, %55 : vector<8x4xf32>
    %57 = math.absf %53 : vector<8x4xf32>
    %cst_32 = arith.constant 0.000000e+00 : f32
    %58 = vector.broadcast %cst_32 : f32 to vector<8x4xf32>
    %59 = arith.subf %58, %57 : vector<8x4xf32>
    %60 = math.exp %59 : vector<8x4xf32>
    %61 = math.log1p %60 : vector<8x4xf32>
    %62 = arith.addf %51, %61 : vector<8x4xf32>
    %63 = arith.select %54, %56, %62 : vector<8x4xi1>, vector<8x4xf32>
    %cst_33 = arith.constant 0.899999976 : f32
    %64 = vector.broadcast %cst_33 : f32 to vector<8x4xf32>
    %65 = arith.mulf %64, %63 : vector<8x4xf32>
    %cst_34 = arith.constant 1.000000e-01 : f32
    %66 = vector.broadcast %cst_34 : f32 to vector<8x4xf32>
    %67 = arith.addf %66, %65 : vector<8x4xf32>
    %68 = arith.select %49, %46, %67 : vector<8x4xi1>, vector<8x4xf32>
    %c0_35 = arith.constant 0 : index
    %c0_36 = arith.constant 0 : index
    %69 = vector.load %arg13[%c0_35, %c0_36] : memref<8x4xf32, #tpu.memory_space<vmem>>, vector<8x4xf32>
    tpu.vector_store %arg13[%c0_35, %c0_36], %68 {strides = array<i32>} : memref<8x4xf32, #tpu.memory_space<vmem>>, vector<8x4xf32>,
    return
  }
  func.func @transform_0(%arg0: i32) -> (i32, i32) {
    %c0_i32 = arith.constant 0 : i32
    %c0_i32_0 = arith.constant 0 : i32
    return %arg0, %c0_i32 : i32, i32
  }
  func.func @transform_1(%arg0: i32) -> (i32, i32) {
    %c0_i32 = arith.constant 0 : i32
    %c0_i32_0 = arith.constant 0 : i32
    return %arg0, %c0_i32 : i32, i32
  }
  func.func @transform_2(%arg0: i32) -> (i32, i32) {
    %c0_i32 = arith.constant 0 : i32
    %c0_i32_0 = arith.constant 0 : i32
    %c0_i32_1 = arith.constant 0 : i32
    return %c0_i32, %c0_i32_0 : i32, i32
  }
  func.func @transform_3(%arg0: i32) -> (i32, i32) {
    %c0_i32 = arith.constant 0 : i32
    %c0_i32_0 = arith.constant 0 : i32
    %c0_i32_1 = arith.constant 0 : i32
    return %c0_i32, %c0_i32_0 : i32, i32
  }
  func.func @transform_4(%arg0: i32) -> (i32, i32) {
    %c0_i32 = arith.constant 0 : i32
    %c0_i32_0 = arith.constant 0 : i32
    %c0_i32_1 = arith.constant 0 : i32
    return %c0_i32, %c0_i32_0 : i32, i32
  }
  func.func @transform_5(%arg0: i32) -> (i32, i32) {
    %c0_i32 = arith.constant 0 : i32
    %c0_i32_0 = arith.constant 0 : i32
    %c0_i32_1 = arith.constant 0 : i32
    return %c0_i32, %c0_i32_0 : i32, i32
  }
  func.func @transform_6(%arg0: i32) -> (i32, i32) {
    %c0_i32 = arith.constant 0 : i32
    %c0_i32_0 = arith.constant 0 : i32
    %c0_i32_1 = arith.constant 0 : i32
    return %c0_i32, %c0_i32_0 : i32, i32
  }
  func.func @transform_7(%arg0: i32) -> (i32, i32) {
    %c0_i32 = arith.constant 0 : i32
    %c0_i32_0 = arith.constant 0 : i32
    %c0_i32_1 = arith.constant 0 : i32
    return %c0_i32, %c0_i32_0 : i32, i32
  }
  func.func @transform_8(%arg0: i32) -> (i32, i32) {
    %c0_i32 = arith.constant 0 : i32
    %c0_i32_0 = arith.constant 0 : i32
    %c0_i32_1 = arith.constant 0 : i32
    return %c0_i32, %c0_i32_0 : i32, i32
  }
  func.func @transform_9(%arg0: i32) -> (i32, i32) {
    %c0_i32 = arith.constant 0 : i32
    %c0_i32_0 = arith.constant 0 : i32
    %c0_i32_1 = arith.constant 0 : i32
    return %c0_i32, %c0_i32_0 : i32, i32
  }
  func.func @transform_10(%arg0: i32) -> (i32, i32) {
    %c0_i32 = arith.constant 0 : i32
    %c0_i32_0 = arith.constant 0 : i32
    %c0_i32_1 = arith.constant 0 : i32
    return %c0_i32, %c0_i32_0 : i32, i32
  }
  func.func @transform_11(%arg0: i32) -> (i32, i32) {
    %c0_i32 = arith.constant 0 : i32
    %c0_i32_0 = arith.constant 0 : i32
    %c0_i32_1 = arith.constant 0 : i32
    return %c0_i32, %c0_i32_0 : i32, i32
  }
  func.func @transform_12(%arg0: i32) -> (i32, i32) {
    %c0_i32 = arith.constant 0 : i32
    %c0_i32_0 = arith.constant 0 : i32
    return %arg0, %c0_i32 : i32, i32
  }
}

</mosaic_0001>

<bundles_post_ra>
// kernel: decoder_forward.1
= control target key start
LH: loop header
LB: loop body
LE: loop exit
PB: predicated region body
PF: predicated region fallthrough
CT: control target
= control target key end

     0   :  { %s1917_s0 = inlined_call_operand.vmem [shape: f32[16,3], index: 0, kind: input, shape index: {}]   ;;  %s1918_s1 = inlined_call_operand.vmem [shape: s32[16,1], index: 1, kind: input, shape index: {}]   ;;  %s1919_s2 = inlined_call_operand.hbm [shape: f32[2,8], index: 2, kind: input, shape index: {}]   ;;  %s1920_s3 = inlined_call_operand.hbm [shape: f32[3,32], index: 3, kind: input, shape index: {}]   ;;  %s1921_s4 = inlined_call_operand.hbm [shape: f32[8,32], index: 4, kind: input, shape index: {}]   ;;  %s1922_s5 = inlined_call_operand.hbm [shape: f32[1,32], index: 5, kind: input, shape index: {}]   ;;  %s1923_s6 = inlined_call_operand.vmem [shape: f32[32,32], index: 6, kind: input, shape index: {}]   ;;  %s1924_s7 = inlined_call_operand.vmem [shape: f32[1,32], index: 7, kind: input, shape index: {}]   ;;  %s1925_s8 = inlined_call_operand.vmem [shape: f32[32,32], index: 8, kind: input, shape index: {}]   ;;  %s1926_s9 = inlined_call_operand.vmem [shape: f32[1,32], index: 9, kind: input, shape index: {}]   ;;  %s1927_s10 = inlined_call_operand.hbm [shape: f32[32,4], index: 10, kind: input, shape index: {}]   ;;  %s1928_s11 = inlined_call_operand.hbm [shape: f32[1,4], index: 11, kind: input, shape index: {}]   ;;  %s1929_s12 = inlined_call_operand.vmem [shape: f32[16,4], index: 12, kind: output, shape index: {}]  }
   0x1   :  { %1932 = sst [smem:[#allocation16_spill]] %s1919_s2 }
   0x2   :  { %17 = vsyncpa [#allocation3], 0 }
   0x3   :  { %18 = vsyncpa [#allocation5], 0 }
   0x4   :  { %19 = vsyncpa [#allocation8], 0 }
   0x5   :  { %20 = vsyncpa [#allocation11], 0  ;;  %s1661_s21 = smov 0  }
   0x6 LB: > { %s1584_s22 = smov [#allocation4]   ;;  %s1667_s24 = sadd.s32 4294967295, %s1582_s21   ;;  %s1582_s21 = sphi %s1661_s21, %s26_s21  }
   0x7   : > { %s343_s23 = sshll.u32 %s1584_s22, 4  ;;  %p1177_p0 = scmp.ge.s32.totalorder %s1582_s21, 1  ;;  %s1672_s23 = int_to_ptr.vmem [resolvable:$true] %s343_s23 }
   0x8   : > { %p319_p1 = scmp.lt.s32.totalorder %s1582_s21, 3  ;;  %p1930_p2 = scmp.eq.s32.totalorder %s1667_s24, 0 }
   0x9   : > { %s1585_s26 = smov [#allocation7]   ;;  %s1586_s28 = smov [#allocation2]  }
   0xa   : > { %p1674_p3 = pnand %p1177_p0, %p319_p1  ;;  %s365_s27 = sshll.u32 %s1585_s26, 4  ;;  %s1680_s27 = int_to_ptr.vmem [resolvable:$true] %s365_s27 }
   0xb   : > { %s332_s29 = sshll.u32 %s1586_s28, 4  ;;  %s1587_s13 = smov [#allocation6]   ;;  %s1688_s29 = int_to_ptr.vmem [resolvable:$true] %s332_s29 }
   0xc   : > { %s1933_s25 = scalar_select %p1674_p3, 1, 0 }
   0xd   : > { %p1324_p4 = pneg %p1674_p3  ;;  %s354_s14 = sshll.u32 %s1587_s13, 4  ;;  %s1690_s14 = int_to_ptr.vmem [resolvable:$true] %s354_s14 }
   0xe   : > { %s1392_s17 = scalar_lea.hbm %s1920_s3, 64 }
   0xf   : > { %p1684_p5 = pnand %p1930_p2, %p1324_p4  ;;  %p1393_p6 = scmp.ne.s32.totalorder %s1920_s3, %s1392_s17 }
  0x10   : > { %p1399_p10 = scmp.lt.u32.totalorder %s1392_s17, %s1920_s3 }
  0x11   : > { %p1700_p7 = pneg %p1684_p5 }
  0x13   : > { %p1395_p8 = pnand %p1700_p7, %p1393_p6 }
  0x15   : > { %p1396_p9 = pneg %p1395_p8 }
  0x17   : > { %p1401_p11 = pnand %p1399_p10, %p1396_p9 }
  0x19   : > { %1404 = shalt.err (!%p1401_p11)
}
  0x1a   : > { %s1405_s28 = scalar_lea.vmem %s1672_s23, 64  ;;  %p1413_p1 = scmp.lt.s32.totalorder %s1672_s23, %s1672_s23 }
  0x1b   : > { %p1406_p12 = scmp.ne.s32.totalorder %s1672_s23, %s1405_s28  ;;  %p1414_p4 = scmp.lt.s32.totalorder %s1405_s28, %s1405_s28 }
  0x1d   : > { %p1408_p13 = pnand %p1406_p12, %p1700_p7  ;;  %p1415_p6 = por %p1414_p4, %p1413_p1 }
  0x1f   : > { %p1409_p0 = pneg %p1408_p13 }
  0x21   : > { %p1416_p8 = pnand %p1415_p6, %p1409_p0 }
  0x23   : > { %1419 = shalt.err (!%p1416_p8)
}
  0x24   : > { %1330 = dma.hbm_to_vmem [thread:$0]  (!%p1684_p5), %s1920_s3, 64, %s1672_s23, [#allocation5]  }
  0x25   : > { %s1420_s18 = scalar_lea.hbm %s1922_s5, 16 }
  0x26   : > { %p1421_p9 = scmp.ne.s32.totalorder %s1922_s5, %s1420_s18  ;;  %p1427_p12 = scmp.lt.u32.totalorder %s1420_s18, %s1922_s5 }
  0x28   : > { %p1423_p10 = pnand %p1421_p9, %p1700_p7 }
  0x2a   : > { %p1424_p11 = pneg %p1423_p10 }
  0x2c   : > { %p1429_p13 = pnand %p1427_p12, %p1424_p11 }
  0x2e   : > { %1432 = shalt.err (!%p1429_p13)
}
  0x2f   : > { %s1433_s23 = scalar_lea.vmem %s1680_s27, 16  ;;  %s1440_s13 = scalar_lea.vmem %s1680_s27, 32 }
  0x30   : > { %p1434_p0 = scmp.ne.s32.totalorder %s1680_s27, %s1433_s23  ;;  %p1441_p6 = scmp.lt.s32.totalorder %s1680_s27, %s1680_s27 }
  0x31   : > { %p1442_p8 = scmp.lt.s32.totalorder %s1440_s13, %s1433_s23 }
  0x32   : > { %p1436_p1 = pnand %p1434_p0, %p1700_p7 }
  0x33   : > { %p1443_p9 = por %p1442_p8, %p1441_p6 }
  0x34   : > { %p1437_p4 = pneg %p1436_p1 }
  0x36   : > { %p1444_p10 = pnand %p1443_p9, %p1437_p4 }
  0x38   : > { %1447 = shalt.err (!%p1444_p10)
}
  0x39   : > { %1336 = dma.hbm_to_vmem [thread:$0]  (!%p1684_p5), %s1922_s5, 16, %s1680_s27, [#allocation8]  }
  0x3a   : > { %s1936_s2 = sld [smem:[#allocation16_spill]] }
  0x40   : > { %s1448_s19 = scalar_lea.hbm %s1936_s2, 32 }
  0x41   : > { %p1449_p11 = scmp.ne.s32.totalorder %s1936_s2, %s1448_s19  ;;  %p1455_p0 = scmp.lt.u32.totalorder %s1448_s19, %s1936_s2 }
  0x43   : > { %p1451_p12 = pnand %p1449_p11, %p1700_p7 }
  0x45   : > { %p1452_p13 = pneg %p1451_p12 }
  0x47   : > { %p1457_p1 = pnand %p1455_p0, %p1452_p13 }
  0x49   : > { %1460 = shalt.err (!%p1457_p1)
}
  0x4a   : > { %s1461_s27 = scalar_lea.vmem %s1688_s29, 32  ;;  %p1469_p9 = scmp.lt.s32.totalorder %s1688_s29, %s1688_s29 }
  0x4b   : > { %p1462_p4 = scmp.ne.s32.totalorder %s1688_s29, %s1461_s27  ;;  %p1470_p10 = scmp.lt.s32.totalorder %s1461_s27, %s1461_s27 }
  0x4d   : > { %p1464_p6 = pnand %p1462_p4, %p1700_p7  ;;  %p1471_p11 = por %p1470_p10, %p1469_p9 }
  0x4f   : > { %p1465_p8 = pneg %p1464_p6 }
  0x51   : > { %p1472_p12 = pnand %p1471_p11, %p1465_p8 }
  0x53   : > { %1475 = shalt.err (!%p1472_p12)
}
  0x54   : > { %1327 = dma.hbm_to_vmem [thread:$0]  (!%p1684_p5), %s1936_s2, 32, %s1688_s29, [#allocation3]  }
  0x55   : > { %s1476_s18 = scalar_lea.hbm %s1921_s4, 128 }
  0x56   : > { %p1477_p13 = scmp.ne.s32.totalorder %s1921_s4, %s1476_s18  ;;  %p1483_p4 = scmp.lt.u32.totalorder %s1476_s18, %s1921_s4 }
  0x58   : > { %p1479_p0 = pnand %p1477_p13, %p1700_p7 }
  0x5a   : > { %p1480_p1 = pneg %p1479_p0 }
  0x5c   : > { %p1485_p6 = pnand %p1483_p4, %p1480_p1 }
  0x5e   : > { %1488 = shalt.err (!%p1485_p6)
}
  0x5f   : > { %s1489_s29 = scalar_lea.vmem %s1690_s14, 128  ;;  %p1497_p11 = scmp.lt.s32.totalorder %s1690_s14, %s1690_s14 }
  0x60   : > { %p1490_p8 = scmp.ne.s32.totalorder %s1690_s14, %s1489_s29  ;;  %p1498_p12 = scmp.lt.s32.totalorder %s1489_s29, %s1489_s29 }
  0x62   : > { %p1492_p9 = pnand %p1490_p8, %p1700_p7  ;;  %p1499_p13 = por %p1498_p12, %p1497_p11 }
  0x64   : > { %p1493_p10 = pneg %p1492_p9 }
  0x66   : > { %p1500_p0 = pnand %p1499_p13, %p1493_p10 }
  0x68   : > { %1503 = shalt.err (!%p1500_p0)
}
  0x69   : > { %1333 = dma.hbm_to_vmem [thread:$0]  (!%p1684_p5), %s1921_s4, 128, %s1690_s14, [#allocation5]  }
  0x6a   : > { %s1588_s13 = smov [#allocation9]   ;;  %s1504_s18 = scalar_lea.hbm %s1927_s10, 512 }
  0x6b   : > { %s387_s15 = sshll.u32 %s1588_s13, 4  ;;  %p1505_p1 = scmp.ne.s32.totalorder %s1927_s10, %s1504_s18  ;;  %s388_s15 = int_to_ptr.vmem [resolvable:$true] %s387_s15 }
  0x6c   : > { %p1511_p8 = scmp.lt.u32.totalorder %s1504_s18, %s1927_s10 }
  0x6d   : > { %p1507_p4 = pnand %p1505_p1, %p1700_p7 }
  0x6f   : > { %p1508_p6 = pneg %p1507_p4 }
  0x71   : > { %p1513_p9 = pnand %p1511_p8, %p1508_p6 }
  0x73   : > { %1516 = shalt.err (!%p1513_p9)
}
  0x74   : > { %s1517_s14 = scalar_lea.vmem %s388_s15, 512  ;;  %p1525_p13 = scmp.lt.s32.totalorder %s388_s15, %s388_s15 }
  0x75   : > { %p1518_p10 = scmp.ne.s32.totalorder %s388_s15, %s1517_s14  ;;  %p1526_p0 = scmp.lt.s32.totalorder %s1517_s14, %s1517_s14 }
  0x77   : > { %p1520_p11 = pnand %p1518_p10, %p1700_p7  ;;  %p1527_p2 = por %p1526_p0, %p1525_p13 }
  0x79   : > { %p1521_p12 = pneg %p1520_p11 }
  0x7b   : > { %p1528_p3 = pnand %p1527_p2, %p1521_p12 }
  0x7d   : > { %1531 = shalt.err (!%p1528_p3)
}
  0x7e   : > { %s1589_s29 = smov 128   ;;  %s1590_s23 = smov 8  }
  0x7f   : > { %1339 = dma.hbm_to_vmem [thread:$0]  (!%p1684_p5), %s1927_s10, 512, %s388_s15, [#allocation8], %s1589_s29, %s1589_s29, %s1590_s23  }
  0x80   : > { %s1591_s16 = smov [#allocation10]   ;;  %s1532_s22 = scalar_lea.hbm %s1928_s11, 16 }
  0x81   : > { %s401_s17 = sshll.u32 %s1591_s16, 4  ;;  %p1533_p2 = scmp.ne.s32.totalorder %s1928_s11, %s1532_s22  ;;  %s402_s17 = int_to_ptr.vmem [resolvable:$true] %s401_s17 }
  0x82   : > { %p1539_p4 = scmp.lt.u32.totalorder %s1532_s22, %s1928_s11 }
  0x83   : > { %p1535_p3 = pnand %p1533_p2, %p1700_p7 }
  0x85   : > { %p1536_p1 = pneg %p1535_p3 }
  0x87   : > { %p1541_p6 = pnand %p1539_p4, %p1536_p1 }
  0x89   : > { %1544 = shalt.err (!%p1541_p6)
}
  0x8a   : > { %s1545_s15 = scalar_lea.vmem %s402_s17, 16  ;;  %s1552_s29 = scalar_lea.vmem %s402_s17, 32 }
  0x8b   : > { %p1546_p8 = scmp.ne.s32.totalorder %s402_s17, %s1545_s15  ;;  %p1553_p11 = scmp.lt.s32.totalorder %s402_s17, %s402_s17 }
  0x8c   : > { %p1554_p12 = scmp.lt.s32.totalorder %s1552_s29, %s1545_s15 }
  0x8d   : > { %p1548_p9 = pnand %p1546_p8, %p1700_p7 }
  0x8e   : > { %p1555_p13 = por %p1554_p12, %p1553_p11 }
  0x8f   : > { %p1549_p10 = pneg %p1548_p9 }
  0x91   : > { %p1556_p0 = pnand %p1555_p13, %p1549_p10 }
  0x93   : > { %1559 = shalt.err (!%p1556_p0)
}
  0x94   : > { %1342 = dma.hbm_to_vmem [thread:$0]  (!%p1684_p5), %s1928_s11, 16, %s402_s17, [#allocation11]  }
  0x95   : > { %p1937_p2 = scmp.ne.s32.totalorder %s1933_s25, 0 }
  0x96   : > { %p1938_p3 = scmp.eq.s32.totalorder (!%p1937_p2), %s1667_s24, 0 }
  0x97   : > { %428 = sbr.rel (%p1937_p2) target bundleno = 1363 (0x553), region = 68 }
  0x9e   : > { %1565 = dma.done.wait (%p1938_p3), [#allocation3], 32   ;;  %p1939_p7 = pmov %p1938_p3 }
  0x9f   : > { %p1940_p1 = pmov %p1938_p3 }
  0xa0   : > { %1567 = vsyncadd (%p1939_p7), [#allocation3], 4294967264 }
  0xa1   : > { %1569 = dma.done.wait (%p1940_p1), [#allocation5], 192   ;;  %p1941_p4 = pmov %p1940_p1 }
  0xa2   : > { %p1942_p6 = pmov %p1940_p1 }
  0xa3   : > { %1571 = vsyncadd (%p1941_p4), [#allocation5], 4294967104 }
  0xa4   : > { %1573 = dma.done.wait (%p1942_p6), [#allocation8], 528   ;;  %p1943_p5 = pmov %p1940_p1 }
  0xa5   : > { %p1944_p8 = pmov %p1940_p1 }
  0xa6   : > { %1575 = vsyncadd (%p1943_p5), [#allocation8], 4294966768 }
  0xa7   : > { %1577 = dma.done.wait (%p1944_p8), [#allocation11], 16   ;;  %p1945_p9 = pmov %p1940_p1 }
  0xa8   : > { %v1592_v0 = vmov 0.0   ;;  %vm1593_vm0 = vmmov 0   ;;  %p492_p10 = scmp.lt.s32.totalorder %s1667_s24, 1  ;;  %v1594_v1 = vmov 0   ;;  %vm508_vm1 = vcmask 64512   ;;  %v507_v2 = vld [vmem:[#allocation6] sm:$0xff] }
  0xa9   : > { %1579 = vsyncadd (%p1945_p9), [#allocation11], 4294967280  ;;  %1234 = vmatprep.subr.mxu0 %v1592_v0  ;;  %1236 = vmatprep.mubr.msk.f32.mxu0 %vm1593_vm0, %v1592_v0  ;;  %v506_v3 = vld [vmem:[#allocation2] sm:$0x3]  ;;  %vm673_vm2 = vcmask 1042432   ;;  %vm669_vm3 = vcmask 23552   ;;  %v583_v7 = vlaneseq }
  0xaa   : > { %1375 = vset.pattern.permute.xlu0 %v1594_v1  ;;  %1239 = vmatprep.subr.mxu1 %v1592_v0  ;;  %s1947_s24 = smov (!%p492_p10, %s1667_s24), 1  ;;  %v505_v5 = vld [vmem:[#allocation4] sm:$0x7]  ;;  %vm595_vm5 = vcmask 1041408   ;;  %vm591_vm6 = vcmask 15360   ;;  %v762_v16 = vld [vmem:[%s1923_s6 + $0x8] sm:$0xff] }
  0xab   : > { %1241 = vmatprep.mubr.msk.f32.mxu1 %vm1593_vm0, %v1592_v0  ;;  %s1853_s2 = sshll.u32 %s1947_s24, 3  ;;  %1235 = vmatpush3.msra.mxu0 %v507_v2  ;;  %v1868_v8 = vand.u32 127, %v583_v7  ;;  %v761_v15 = vld [vmem:[%s1923_s6] sm:$0xff]  ;;  %v763_v17 = vld [vmem:[%s1923_s6 + $0x10] sm:$0xff]  ;;  %v1595_v18 = vmov 0.0|0.0   ;;  %v764_v20 = vld [vmem:[%s1923_s6 + $0x18] sm:$0xff] }
  0xac   : > { %s499_s20 = scalar_lea.vmem %s1918_s1, %s1853_s2  ;;  %1237 = vmatmul.mubr.msk.f32.vlgmr.msra.gmra.mrb[0].mxu0 %vm508_vm1, %v506_v3  ;;  %1244 = vmatprep.subr.mxu0 %v1592_v0  ;;  %s495_s16 = scalar_lea.vmem %s1917_s0, %s1853_s2  ;;  %v1283_v19 = vpack.c.bf16 %v762_v16, %v761_v15  ;;  %v1286_v21 = vpack.c.bf16 %v764_v20, %v763_v17  ;;  %v1201_v23 = vld [vmem:[#allocation7] ss:$0 sm:$0xff]  ;;  %vm772_vm7 = vcmask 261120   ;;  %v852_v31 = vld [vmem:[%s1925_s8] sm:$0xff]  ;;  %v854_v33 = vld [vmem:[%s1925_s8 + $0x10] sm:$0xff]  ;;  %vm1048_vm11 = vcmask 31744  }
  0xad   : > { %v582_v4 = vld [vmem:[%s499_s20] sm:$0xff]  ;;  %1245 = vmatpush3.msk.msra.mxu0 %vm673_vm2, %v505_v5  ;;  %1246 = vmatprep.mubr.msk.f32.mxu0 %vm1593_vm0, %v1592_v0  ;;  %v853_v32 = vld [vmem:[%s1925_s8 + $0x8] sm:$0xff]  ;;  %v855_v35 = vld [vmem:[%s1925_s8 + $0x18] sm:$0xff]  ;;  %vm1026_vm10 = vcmp.lt.s32.totalorder %v1868_v8, 2  ;;  %s503_s28 = scalar_lea.vmem %s1929_s12, %s1853_s2 }
  0xae   : > { %586 = vperm.xlu0 %1375, %v582_v4   ;;  %v504_v6 = vld [vmem:[%s495_s16] sm:$0xff]  ;;  %1288 = vmatprep.subr.bf16.mxu0 %v1595_v18  ;;  %v1289_v34 = vpack.c.bf16 %v853_v32, %v852_v31  ;;  %v1292_v36 = vpack.c.bf16 %v855_v35, %v854_v33  ;;  %v942_v45 = vld [vmem:[#allocation9] sm:$0xff]  ;;  %v943_v46 = vld [vmem:[#allocation9 + $0x8] sm:$0xff] }
  0xaf   : > { %v1203_v37 = vld [vmem:[%s1924_s7] ss:$0 sm:$0xff]  ;;  %v1295_v48 = vpack.c.bf16 %v943_v46, %v942_v45  ;;  %v945_v49 = vld [vmem:[#allocation9 + $0x18] sm:$0xff]  ;;  %v1209_v59 = vld [vmem:[#allocation10] ss:$0 sm:$0xff] }
  0xb0   : > { %1247 = vmatmul.mubr.msk.f32.vlgmr.msra.gmra.mrb[2].mxu0 %vm669_vm3, %v504_v6  ;;  %v944_v47 = vld [vmem:[#allocation9 + $0x10] sm:$0xff] }
  0xb1   : > { %1268 = vmatprep.mubr.msk.f32.mxu0 %vm1593_vm0, %v1592_v0  ;;  %1290 = vmatpush3.bf16.msra.mxu0 %v1289_v34  ;;  %v1298_v50 = vpack.c.bf16 %v945_v49, %v944_v47  ;;  %v1206_v51 = vld [vmem:[%s1926_s9] ss:$0 sm:$0xff] }
  0xb2   : > { %1291 = vmatprep.subr.bf16.mxu0 %v1595_v18 }
  0xb5   : > { %1293 = vmatpush3.bf16.msra.mxu0 %v1292_v36 }
 0x12d   : > { %v587_v9 = vpop.permute.xlu0 %586 }
 0x12e   : > { %vm588_vm4 = vcmp.eq.s32.totalorder %v587_v9, %v1868_v8 }
 0x12f   : > { %v1196_v10 = vsel %vm588_vm4, 1.0, %v1592_v0 }
 0x17f   : > { %v578_v11 = vpop.f32.mrb[0].mxu0 }
 0x180   : > { %v1238_v12 = vpop.f32.mrb[1].mxu0  ;;  %1240 = vmatpush3.msk.msra.mxu1 %vm595_vm5, %v578_v11 }
 0x181   : > { %1242 = vmatmul.mubr.msk.f32.vlgmr.msra.gmra.mrb[0].mxu1 %vm591_vm6, %v1196_v10  ;;  %1282 = vmatprep.subr.bf16.mxu1 %v1595_v18 }
 0x182   : > { %1257 = vmatprep.mubr.msk.f32.mxu1 %vm1593_vm0, %v1592_v0  ;;  %1284 = vmatpush3.bf16.msra.mxu1 %v1283_v19 }
 0x183   : > { %v743_v13 = vpop.f32.mrb[2].mxu0  ;;  %1285 = vmatprep.subr.bf16.mxu1 %v1595_v18 }
 0x184   : > { %v1248_v14 = vpop.f32.mrb[3].mxu0 }
 0x186   : > { %1287 = vmatpush3.bf16.msra.mxu1 %v1286_v21 }
 0x187   : > { %1294 = vmatprep.subr.bf16.mxu1 %v1595_v18 }
 0x254   : > { %v665_v22 = vpop.f32.mrb[0].mxu1 }
 0x255   : > { %v744_v24 = vadd.f32 %v743_v13, %v665_v22  ;;  %v1243_v25 = vpop.f32.mrb[1].mxu1 }
 0x257   : > { %v754_v26 = vadd.f32 %v1201_v23, %v744_v24 }
 0x259   : > { %v1202_v27 = vmul.f32 -1.442695, %v754_v26 }
 0x25b   : > { %1376 = vpow2.f32 %v1202_v27 }
 0x265   : > { %v1377_v28 = vpop.eup %1376 }
 0x266   : > { %v758_v29 = vadd.f32 1.0, %v1377_v28 }
 0x268   : > { %1378 = vrcp.f32 %v758_v29 }
 0x272   : > { %v1379_v30 = vpop.eup %1378 }
 0x273   : > { %1258 = vmatmul.mubr.msk.f32.vlgmr.msra.gmra.mrb[2].mxu1 %vm772_vm7, %v1379_v30 }
 0x274   : > { %1279 = vmatprep.mubr.msk.f32.mxu1 %vm1593_vm0, %v1592_v0  ;;  %1296 = vmatpush3.bf16.msra.mxu1 %v1295_v48 }
 0x275   : > { %1297 = vmatprep.subr.bf16.mxu1 %v1595_v18 }
 0x278   : > { %1299 = vmatpush3.bf16.msra.mxu1 %v1298_v50 }
 0x346   : > { %v842_v38 = vpop.f32.mrb[2].mxu1 }
 0x347   : > { %v843_v39 = vadd.f32 %v1203_v37, %v842_v38  ;;  %v1259_v40 = vpop.f32.mrb[3].mxu1 }
 0x349   : > { %v1205_v41 = vmul.f32 -1.442695, %v843_v39 }
 0x34b   : > { %1380 = vpow2.f32 %v1205_v41 }
 0x355   : > { %v1381_v42 = vpop.eup %1380 }
 0x356   : > { %v849_v43 = vadd.f32 1.0, %v1381_v42 }
 0x358   : > { %1382 = vrcp.f32 %v849_v43 }
 0x362   : > { %v1383_v44 = vpop.eup %1382 }
 0x363   : > { %1269 = vmatmul.mubr.msk.f32.vlgmr.msra.gmra.mrb[4].mxu0 %vm772_vm7, %v1383_v44 }
 0x436   : > { %v932_v52 = vpop.f32.mrb[4].mxu0 }
 0x437   : > { %v933_v53 = vadd.f32 %v1206_v51, %v932_v52  ;;  %v1270_v54 = vpop.f32.mrb[5].mxu0 }
 0x439   : > { %v1208_v55 = vmul.f32 -1.442695, %v933_v53 }
 0x43b   : > { %1384 = vpow2.f32 %v1208_v55 }
 0x445   : > { %v1385_v56 = vpop.eup %1384 }
 0x446   : > { %v939_v57 = vadd.f32 1.0, %v1385_v56 }
 0x448   : > { %1386 = vrcp.f32 %v939_v57 }
 0x452   : > { %v1387_v58 = vpop.eup %1386 }
 0x453   : > { %1280 = vmatmul.mubr.msk.f32.vlgmr.msra.gmra.mrb[4].mxu1 %vm772_vm7, %v1387_v58 }
 0x526   : > { %v1022_v60 = vpop.f32.mrb[4].mxu1 }
 0x527   : > { %v1023_v61 = vadd.f32 %v1209_v59, %v1022_v60  ;;  %v1281_v62 = vpop.f32.mrb[5].mxu1 }
 0x529   : > { %v1030_v63 = vand.u32 2147483647, %v1023_v61  ;;  %v1027_v11 = vmax.f32 %v1023_v61, 0.0  ;;  %vm1028_vm9 = vcmp.ne.f32.partialorder %v1023_v61, %v1023_v61 }
 0x52b   : > { %v1031_v0 = vsub.f32 0.0, %v1030_v63 }
 0x52d   : > { %v1032_v1 = vmul.f32 1.442695, %v1031_v0 }
 0x52f   : > { %1388 = vpow2.f32 %v1032_v1 }
 0x539   : > { %v1389_v2 = vpop.eup %1388 }
 0x53a   : > { %v1034_v3 = vadd.f32 1.0, %v1389_v2  ;;  %v1037_v4 = vmul.f32 -0.5, %v1389_v2  ;;  %v1040_v6 = vand.u32 2147483647, %v1389_v2 }
 0x53c   : > { %1390 = vlog2.f32 %v1034_v3  ;;  %v1038_v5 = vadd.f32 1.0, %v1037_v4  ;;  %vm1041_vm8 = vcmp.lt.f32.partialorder %v1040_v6, 0.0004427343 }
 0x53e   : > { %v1039_v10 = vmul.f32 %v1389_v2, %v1038_v5 }
 0x546   : > { %v1391_v7 = vpop.eup %1390 }
 0x547   : > { %v1036_v9 = vmul.f32 0.6931472, %v1391_v7 }
 0x549   : > { %v1042_v12 = vsel %vm1041_vm8, %v1039_v10, %v1036_v9 }
 0x54a   : > { %v1043_v13 = vadd.f32 %v1042_v12, %v1027_v11 }
 0x54c   : > { %v1044_v14 = vsel %vm1028_vm9, %v1023_v61, %v1043_v13 }
 0x54d   : > { %v1045_v15 = vmul.f32 0.9, %v1044_v14 }
 0x54f   : > { %v1046_v16 = vadd.f32 0.1, %v1045_v15 }
 0x551   : > { %v1047_v17 = vsel %vm1026_vm10, %v1023_v61, %v1046_v16 }
 0x552   : > { %1049 = vst.msk [vmem:[%s503_s28] sm:$0xff] %vm1048_vm11, %v1047_v17 }
 0x553 PF: > { %s26_s21 = sadd.s32 1, %s1582_s21  }
 0x554   : > { %p23_p11 = scmp.ge.s32.totalorder %s26_s21, 4  }
 0x556   :  { %25 = sbr.rel (!%p23_p11) target bundleno = 6 (0x6), region = 126 }
 0x55d   :  { %1069 = vsyncpa [#allocation3], 1 }
 0x55e   :  { %1071 = vsyncpa [#allocation3 + $0x1], 1 }
 0x55f   :  { %1072 = vsyncpa [#allocation5], 1 }
 0x560   :  { %1073 = vsyncpa [#allocation8], 1 }
 0x561   :  { %1074 = vsyncpa [#allocation11], 1 }

</bundles_post_ra>
